<compile_context>
chip_gen: v6e
topology: v6e:2x2x1
jax: 0.10.0
libtpu: 0.0.40
codegen_flags: <defaults>
</compile_context>

<pallas_src>
import jax
import jax.numpy as jnp
import numpy as np
from jax.experimental import pallas as pl
from jax.experimental.pallas import tpu as pltpu


def _round_up(x, m):
    return (x + m - 1) // m * m


def _make_kernel(C, crp):
    """Kernel closure over the static channel counts (C, padded reduced channels crp)."""

    def kernel(x_ref, w_ref, b_ref, alpha_ref, o_ref):
        x = x_ref[0]                                           # (C, HW) f32, HW on lanes

        # One fused "conv" matmul for e1 / e2 / e3 / ones-row (bf16 MXU, f32 acc + bias).
        ecat = jnp.dot(w_ref[...], x.astype(jnp.bfloat16),
                       preferred_element_type=jnp.float32) + b_ref[...]      # (R, HW)

        e1 = ecat[0:crp].astype(jnp.bfloat16)                  # (crp, HW)  pad rows are 0
        e2 = ecat[crp:2 * crp].astype(jnp.bfloat16)            # (crp, HW)
        e3x = ecat[2 * crp:]                                   # rows 0:C = e3, row C = ones

        # Attention logits: s[i, j] = e1[:, i] . e2[:, j]  (== e1^T e2).
        s = jax.lax.dot_general(e1, e2, (((0,), (0,)), ((), ())),
                                preferred_element_type=jnp.float32)          # (HW, HW)

        # Max-stabilized, UNNORMALIZED softmax numerator (f32 VPU/EUP math).
        m = jnp.max(s, axis=-1, keepdims=True)
        p = jnp.exp(s - m)                                                   # (HW, HW)

        # out_ext[c, i] = sum_j e3x[c, j] * p[i, j]  (== e3x @ p^T).  The ones row of
        # e3x yields l[i] = sum_j p[i, j] in lane-dense orientation at row C.
        out_ext = jax.lax.dot_general(e3x.astype(jnp.bfloat16),
                                      p.astype(jnp.bfloat16),
                                      (((1,), (1,)), ((), ())),
                                      preferred_element_type=jnp.float32)    # (R-2crp, HW)
        out_raw = out_ext[0:C]                                 # (C, HW) unnormalized result
        l_row = out_ext[C:C + 1]                               # (1, HW) softmax denominators

        # Deferred normalization with alpha folded into the (1, HW) scale vector.
        scale = alpha_ref[0, 0] * pl.reciprocal(l_row, approx=True)          # (1, HW)
        o_ref[0] = (out_raw * scale + x).astype(o_ref.dtype)

    return kernel


def position_attention_forward(x_nchw, w1, b1, w2, b2, w3, b3, alpha):
    """PositionAttention forward.

    x_nchw: (N, C, H, W); w1/w2: (C//r, C, 1, 1); w3: (C, C, 1, 1); b1/b2: (C//r,);
    b3: (C,); alpha: scalar parameter.
    """
    N, C, H, W = x_nchw.shape
    HW = H * W
    Cr = w1.shape[0]
    assert C % 8 == 0, "channels must be a multiple of 8 for this kernel"
    assert HW % 128 == 0, "H*W must be a multiple of 128 for this kernel"

    # Flatten spatial dims onto lanes (free reshape of NCHW; no transpose, no padding of x).
    x = x_nchw.reshape(N, C, HW).astype(jnp.float32)

    # Stack w1 | w2 | w3 | ones-row into a single weight / bias (sublane-aligned slots).
    crp = max(8, _round_up(Cr, 8))        # padded reduced-channel rows (zero contribution)
    r_e3 = 2 * crp
    r_ones = r_e3 + C
    R = _round_up(r_ones + 1, 16)         # bf16-friendly total row count

    w1_2d = w1.reshape(Cr, C).astype(jnp.float32)
    w2_2d = w2.reshape(Cr, C).astype(jnp.float32)
    w3_2d = w3.reshape(C, C).astype(jnp.float32)

    def pad_rows(a, rows):
        return jnp.pad(a, ((0, rows - a.shape[0]), (0, 0)))

    w_stk = jnp.concatenate([
        pad_rows(w1_2d, crp),
        pad_rows(w2_2d, crp),
        w3_2d,
        jnp.zeros((R - r_ones, C), jnp.float32),     # ones-row weight (zeros) + padding
    ], axis=0)

    tail_bias = jnp.zeros((R - r_ones, 1), jnp.float32).at[0, 0].set(1.0)  # unit bias = ones row
    b_stk = jnp.concatenate([
        pad_rows(b1.astype(jnp.float32).reshape(Cr, 1), crp),
        pad_rows(b2.astype(jnp.float32).reshape(Cr, 1), crp),
        b3.astype(jnp.float32).reshape(C, 1),
        tail_bias,
    ], axis=0)

    w_stk = w_stk.astype(jnp.bfloat16)               # MXU operand; exact for 0/1 rows
    alpha2d = jnp.asarray(alpha, jnp.float32).reshape(1, 1)

    kernel = _make_kernel(C, crp)

    out = pl.pallas_call(
        kernel,
        grid=(N,),
        in_specs=[
            pl.BlockSpec((1, C, HW), lambda n: (n, 0, 0)),            # x (per-image slab)
            pl.BlockSpec((R, C), lambda n: (0, 0)),                   # stacked weights (bf16)
            pl.BlockSpec((R, 1), lambda n: (0, 0)),                   # stacked bias column
            pl.BlockSpec(memory_space=pltpu.MemorySpace.SMEM),        # alpha scalar
        ],
        out_specs=pl.BlockSpec((1, C, HW), lambda n: (n, 0, 0)),
        out_shape=jax.ShapeDtypeStruct((N, C, HW), jnp.float32),
        compiler_params=pltpu.CompilerParams(
            dimension_semantics=("parallel",)),
    )(x, w_stk, b_stk, alpha2d)

    return out.reshape(N, C, H, W)


def _reference(x, w1, b1, w2, b2, w3, b3, alpha):
    """Pure-JAX replica of the PyTorch PositionAttention.forward."""
    n, c, h, w = x.shape
    hw = h * w

    def conv1x1(inp, wt, bias):
        return (jnp.einsum('nchw,oc->nohw', inp, wt[:, :, 0, 0])
                + bias[None, :, None, None])

    e1 = conv1x1(x, w1, b1).reshape(n, -1, hw).transpose(0, 2, 1)        # (n, hw, cr)
    e2 = conv1x1(x, w2, b2).reshape(n, -1, hw)                            # (n, cr, hw)
    att = jax.nn.softmax(jnp.einsum('nik,nkj->nij', e1, e2), axis=-1)     # (n, hw, hw)
    e3 = conv1x1(x, w3, b3).reshape(n, -1, hw)                            # (n, c, hw)
    out = jnp.einsum('ncj,nij->nci', e3, att).reshape(n, c, h, w)
    return alpha * out + x


if __name__ == "__main__":
    # Small shapes consistent with the module: batch=2, channels=32, reduction=8,
    # spatial=16 (so channels//reduction = 4 and H*W = 256).
    N, C, H, W = 2, 32, 16, 16
    reduction = 8
    Cr = C // reduction

    key = jax.random.PRNGKey(0)
    k = jax.random.split(key, 7)
    x = jax.random.normal(k[0], (N, C, H, W), dtype=jnp.float32)
    w1 = jax.random.normal(k[1], (Cr, C, 1, 1), dtype=jnp.float32) * 0.1
    b1 = jax.random.normal(k[2], (Cr,), dtype=jnp.float32) * 0.1
    w2 = jax.random.normal(k[3], (Cr, C, 1, 1), dtype=jnp.float32) * 0.1
    b2 = jax.random.normal(k[4], (Cr,), dtype=jnp.float32) * 0.1
    w3 = jax.random.normal(k[5], (C, C, 1, 1), dtype=jnp.float32) * 0.1
    b3 = jax.random.normal(k[6], (C,), dtype=jnp.float32) * 0.1
    # nn.Parameter(torch.zeros(1)) init would make forward an identity; use a
    # nonzero alpha so the attention path is actually exercised by the check.
    alpha = jnp.float32(0.5)

    out = jax.block_until_ready(
        position_attention_forward(x, w1, b1, w2, b2, w3, b3, alpha))
    ref = jax.block_until_ready(_reference(x, w1, b1, w2, b2, w3, b3, alpha))

    assert out.shape == (N, C, H, W)
    # bf16 MXU operands + approx reciprocal -> slightly looser tolerance than pure f32.
    np.testing.assert_allclose(np.asarray(out), np.asarray(ref),
                               rtol=3e-2, atol=3e-2)
    print("KERNEL_OK")
</pallas_src>

<mosaic_0001>
module attributes {stable_mosaic.version = 11 : i64} {
  func.func @kernel(%arg0: i32, %arg1: memref<1x32x256xf32, #tpu.memory_space<vmem>>, %arg2: memref<64x32xbf16, #tpu.memory_space<vmem>>, %arg3: memref<64x1xf32, #tpu.memory_space<vmem>>, %arg4: memref<1x1xf32, #tpu.memory_space<smem>>, %arg5: memref<1x32x256xf32, #tpu.memory_space<vmem>>) attributes {dimension_semantics = [#tpu.dimension_semantics<parallel>], iteration_bounds = array<i64: 2>, scalar_prefetch = 0 : i64, scratch_operands = 0 : i64, tpu.core_type = #tpu.core_type<tc>, window_params = [{transform_indices = @transform_0, window_bounds = array<i64: 1, 32, 256>}, {pipeline_mode = #tpu.pipeline_mode<synchronous>, transform_indices = @transform_1, window_bounds = array<i64: 64, 32>}, {pipeline_mode = #tpu.pipeline_mode<synchronous>, transform_indices = @transform_2, window_bounds = array<i64: 64, 1>}, {transform_indices = @transform_3, window_bounds = array<i64: 1, 1>}, {transform_indices = @transform_4, window_bounds = array<i64: 1, 32, 256>}]} {
    %c0 = arith.constant 0 : index
    %c0_0 = arith.constant 0 : index
    %c0_1 = arith.constant 0 : index
    %0 = vector.load %arg1[%c0, %c0_0, %c0_1] : memref<1x32x256xf32, #tpu.memory_space<vmem>>, vector<1x32x256xf32>
    %1 = vector.shape_cast %0 : vector<1x32x256xf32> to vector<32x256xf32>
    %c0_2 = arith.constant 0 : index
    %c0_3 = arith.constant 0 : index
    %2 = vector.load %arg2[%c0_2, %c0_3] : memref<64x32xbf16, #tpu.memory_space<vmem>>, vector<64x32xbf16>
    %3 = arith.truncf %1 : vector<32x256xf32> to vector<32x256xbf16>
    %cst = arith.constant dense<0.000000e+00> : vector<64x256xf32>
    %4 = tpu.matmul %2, %3, %cst {dimension_numbers = #tpu.dot_dimension_numbers<[1], [0], [0], [1], [0, 0, 1, 1], [], []>} : vector<64x32xbf16>, vector<32x256xbf16>, vector<64x256xf32> -> vector<64x256xf32>
    %c0_4 = arith.constant 0 : index
    %c0_5 = arith.constant 0 : index
    %5 = vector.load %arg3[%c0_4, %c0_5] : memref<64x1xf32, #tpu.memory_space<vmem>>, vector<64x1xf32>
    %6 = vector.broadcast %5 : vector<64x1xf32> to vector<64x256xf32>
    %7 = arith.addf %4, %6 : vector<64x256xf32>
    %8 = vector.extract_strided_slice %7 {offsets = [0, 0], sizes = [8, 256], strides = [1, 1]} : vector<64x256xf32> to vector<8x256xf32>
    %9 = arith.truncf %8 : vector<8x256xf32> to vector<8x256xbf16>
    %10 = vector.extract_strided_slice %7 {offsets = [8, 0], sizes = [8, 256], strides = [1, 1]} : vector<64x256xf32> to vector<8x256xf32>
    %11 = arith.truncf %10 : vector<8x256xf32> to vector<8x256xbf16>
    %12 = vector.extract_strided_slice %7 {offsets = [16, 0], sizes = [48, 256], strides = [1, 1]} : vector<64x256xf32> to vector<48x256xf32>
    %cst_6 = arith.constant dense<0.000000e+00> : vector<256x256xf32>
    %13 = tpu.matmul %9, %11, %cst_6 {dimension_numbers = #tpu.dot_dimension_numbers<[0], [0], [1], [1], [0, 1, 1, 1], [], []>} : vector<8x256xbf16>, vector<8x256xbf16>, vector<256x256xf32> -> vector<256x256xf32>
    %cst_7 = arith.constant dense<0xFF800000> : vector<256xf32>
    %14 = vector.multi_reduction <maximumf>, %13, %cst_7 [1] : vector<256x256xf32> to vector<256xf32>
    %15 = vector.shape_cast %14 : vector<256xf32> to vector<256x1xf32>
    %16 = vector.broadcast %15 : vector<256x1xf32> to vector<256x256xf32>
    %17 = arith.subf %13, %16 : vector<256x256xf32>
    %18 = math.exp %17 : vector<256x256xf32>
    %19 = arith.truncf %12 : vector<48x256xf32> to vector<48x256xbf16>
    %20 = arith.truncf %18 : vector<256x256xf32> to vector<256x256xbf16>
    %cst_8 = arith.constant dense<0.000000e+00> : vector<48x256xf32>
    %21 = tpu.matmul %19, %20, %cst_8 {dimension_numbers = #tpu.dot_dimension_numbers<[1], [1], [0], [0], [0, 0, 1, 0], [], []>} : vector<48x256xbf16>, vector<256x256xbf16>, vector<48x256xf32> -> vector<48x256xf32>
    %22 = vector.extract_strided_slice %21 {offsets = [0, 0], sizes = [32, 256], strides = [1, 1]} : vector<48x256xf32> to vector<32x256xf32>
    %23 = vector.extract_strided_slice %21 {offsets = [32, 0], sizes = [1, 256], strides = [1, 1]} : vector<48x256xf32> to vector<1x256xf32>
    %c0_9 = arith.constant 0 : index
    %c0_10 = arith.constant 0 : index
    %24 = memref.load %arg4[%c0_9, %c0_10] : memref<1x1xf32, #tpu.memory_space<smem>>
    %25 = tpu.reciprocal %23 {approx = true} : vector<1x256xf32> -> vector<1x256xf32>
    %26 = vector.broadcast %24 : f32 to vector<1x256xf32>
    %27 = arith.mulf %26, %25 : vector<1x256xf32>
    %28 = vector.broadcast %27 : vector<1x256xf32> to vector<32x256xf32>
    %29 = arith.mulf %22, %28 : vector<32x256xf32>
    %30 = arith.addf %29, %1 : vector<32x256xf32>
    %c0_11 = arith.constant 0 : index
    %c0_12 = arith.constant 0 : index
    %c0_13 = arith.constant 0 : index
    %31 = vector.load %arg5[%c0_11, %c0_12, %c0_13] : memref<1x32x256xf32, #tpu.memory_space<vmem>>, vector<1x32x256xf32>
    %32 = vector.shape_cast %31 : vector<1x32x256xf32> to vector<32x256xf32>
    %33 = vector.shape_cast %30 : vector<32x256xf32> to vector<1x32x256xf32>
    tpu.vector_store %arg5[%c0_11, %c0_12, %c0_13], %33 {strides = array<i32>} : memref<1x32x256xf32, #tpu.memory_space<vmem>>, vector<1x32x256xf32>,
    return
  }
  func.func @transform_0(%arg0: i32) -> (i32, i32, i32) {
    %c0_i32 = arith.constant 0 : i32
    %c0_i32_0 = arith.constant 0 : i32
    %c0_i32_1 = arith.constant 0 : i32
    return %arg0, %c0_i32, %c0_i32_0 : i32, i32, i32
  }
  func.func @transform_1(%arg0: i32) -> (i32, i32) {
    %c0_i32 = arith.constant 0 : i32
    %c0_i32_0 = arith.constant 0 : i32
    %c0_i32_1 = arith.constant 0 : i32
    return %c0_i32, %c0_i32_0 : i32, i32
  }
  func.func @transform_2(%arg0: i32) -> (i32, i32) {
    %c0_i32 = arith.constant 0 : i32
    %c0_i32_0 = arith.constant 0 : i32
    %c0_i32_1 = arith.constant 0 : i32
    return %c0_i32, %c0_i32_0 : i32, i32
  }
  func.func @transform_3(%arg0: i32) -> (i32, i32) {
    %c0_i32 = arith.constant 0 : i32
    %c0_i32_0 = arith.constant 0 : i32
    %c0_i32_1 = arith.constant 0 : i32
    return %c0_i32, %c0_i32_0 : i32, i32
  }
  func.func @transform_4(%arg0: i32) -> (i32, i32, i32) {
    %c0_i32 = arith.constant 0 : i32
    %c0_i32_0 = arith.constant 0 : i32
    %c0_i32_1 = arith.constant 0 : i32
    return %arg0, %c0_i32, %c0_i32_0 : i32, i32, i32
  }
}

</mosaic_0001>

<bundles_post_ra>
// kernel: tpu_custom_call.1
= control target key start
LH: loop header
LB: loop body
LE: loop exit
PB: predicated region body
PF: predicated region fallthrough
CT: control target
= control target key end

     0   :  { %s2187_s0 = inlined_call_operand.hbm [shape: f32[2,32,256], index: 0, kind: input, shape index: {}]   ;;  %s2188_s1 = inlined_call_operand.vmem [shape: bf16[64,32], index: 1, kind: input, shape index: {}]   ;;  %s2189_s2 = inlined_call_operand.vmem [shape: f32[64,1], index: 2, kind: input, shape index: {}]   ;;  %s2190_s3 = inlined_call_operand.<no memory space> [shape: f32[1,1], index: 3, kind: input, shape index: {}]   ;;  %s2191_s4 = inlined_call_operand.hbm [shape: f32[2,32,256], index: 4, kind: output, shape index: {}]  }
   0x1   :  { %9 = sst [smem:[#allocation2]] %s2190_s3 }
   0x2   :  { %10 = vsyncpa [#allocation4], 0 }
   0x3   :  { %12 = vsyncpa [#allocation4 + $0x1], 0 }
   0x4   :  { %13 = vsyncpa [#allocation5], 0 }
   0x5   :  { %15 = vsyncpa [#allocation5 + $0x1], 0  ;;  %s1588_s17 = smov 0   ;;  %s1590_s18 = smov 0  }
   0x6   :  { %s1592_s19 = smov 0   ;;  %s1594_s20 = smov 0  }
   0x7 LB: > { %s1609_s3 = sadd.s32 4294967295, %s1551_s20   ;;  %s1189_s21 = sadd.s32 4294967294, %s1551_s20   ;;  %s1551_s20 = sphi %s1594_s20, %s2251_s20   ;;  %s1547_s19 = sphi %s1592_s19, %s2250_s19   ;;  %s1543_s18 = sphi %s1590_s18, %s2249_s18   ;;  %s1539_s17 = sphi %s1588_s17, %s2248_s17  }
   0x8   : > { %s1613_s22 = sadd.s32 1, %s1551_s20   ;;  %s28_s23 = sadd.s32 1, %s1547_s19 }
   0x9   : > { %s25_s24 = ssub.s32 %s1551_s20, %s1613_s22  ;;  %p35_p0 = scmp.ne.s32.totalorder %s1547_s19, %s1543_s18 }
   0xa   : > { %p26_p1 = scmp.eq.s32.totalorder %s25_s24, 0  ;;  %p36_p2 = scmp.eq.s32.totalorder %s1551_s20, 0 }
   0xb   : > { %p41_p3 = scmp.ne.s32.totalorder %s1543_s18, %s1539_s17  ;;  %p42_p4 = scmp.eq.s32.totalorder %s1609_s3, 0 }
   0xc   : > { %s1625_s25 = scalar_select %p26_p1, %s1547_s19, %s28_s23  }
   0xd   : > { %p1627_p5 = por %p36_p2, %p35_p0  ;;  %p1631_p6 = por %p42_p4, %p41_p3 }
   0xe   : > { %p128_p7 = scmp.eq.s32.totalorder %s1609_s3, 1  ;;  %p134_p8 = scmp.eq.s32.totalorder %s1189_s21, 1 }
   0xf   : > { %s2210_s27 = scalar_select %p1631_p6, 1, 0 }
  0x10   : > { %p1274_p10 = scmp.lt.s32.totalorder %s1551_s20, 2  ;;  %p1638_p11 = por %p128_p7, %p35_p0 }
  0x11   : > { %p1642_p12 = por %p134_p8, %p41_p3  ;;  %s163_s30 = sand.u32 1, %s1547_s19  }
  0x12   : > { %s2211_s28 = scalar_select %p1638_p11, 1, 0 }
  0x13   : > { %s2212_s29 = scalar_select %p1642_p12, 1, 0 }
  0x14   : > { %s1228_s5 = sshll.u32 %s1551_s20, 10  ;;  %s1192_s6 = sshll.u32 %s163_s30, 6 }
  0x15   : > { %s1651_s9 = scalar_lea.hbm %s2187_s0, %s1228_s5  ;;  %s167_s10 = scalar_lea.vmem [#allocation3], %s1192_s6 }
  0x16   : > { %s174_s11 = sshll.u32 %s167_s10, 4  ;;  %p1655_p13 = pnand %p1274_p10, %p1627_p5  ;;  %s1659_s11 = int_to_ptr.vmem [resolvable:$true] %s174_s11 }
  0x17   : > { %s1661_s13 = scalar_lea.sflag [#allocation4], %s163_s30  ;;  %s1459_s14 = scalar_lea.hbm %s1651_s9, 1024 }
  0x18   : > { %p1460_p0 = scmp.ne.s32.totalorder %s1651_s9, %s1459_s14  ;;  %p1461_p1 = pneg %p1655_p13 }
  0x19   : > { %s1464_s21 = scalar_lea.hbm %s2187_s0, 2048  ;;  %p1465_p4 = scmp.lt.s32.totalorder %s1651_s9, %s2187_s0 }
  0x1a   : > { %p1462_p2 = pnand %p1461_p1, %p1460_p0  ;;  %p1466_p5 = scmp.lt.s32.totalorder %s1464_s21, %s1459_s14 }
  0x1c   : > { %p1463_p3 = pneg %p1462_p2  ;;  %p1467_p7 = por %p1466_p5, %p1465_p4 }
  0x1e   : > { %p1468_p8 = pnand %p1467_p7, %p1463_p3 }
  0x20   : > { %1471 = shalt.err (!%p1468_p8)
}
  0x21   : > { %s1472_s26 = scalar_lea.vmem %s1659_s11, 1024  ;;  %s1553_s30 = smov [#allocation3]  }
  0x22   : > { %p1473_p10 = scmp.ne.s32.totalorder %s1659_s11, %s1472_s26  ;;  %s1477_s5 = sshll.u32 %s1553_s30, 4  ;;  %s1478_s5 = int_to_ptr.vmem [resolvable:$false] %s1477_s5 }
  0x23   : > { %s1479_s6 = scalar_lea.vmem %s1478_s5, 2048  ;;  %p1480_p2 = scmp.lt.s32.totalorder %s1659_s11, %s1478_s5 }
  0x24   : > { %p1475_p9 = pnand %p1473_p10, %p1461_p1  ;;  %p1481_p12 = scmp.lt.s32.totalorder %s1479_s6, %s1472_s26 }
  0x26   : > { %p1476_p0 = pneg %p1475_p9  ;;  %p1482_p11 = por %p1481_p12, %p1480_p2 }
  0x28   : > { %p1483_p6 = pnand %p1482_p11, %p1476_p0 }
  0x2a   : > { %1486 = shalt.err (!%p1483_p6)
}
  0x2b   : > { %s1554_s7 = smov 256   ;;  %s1555_s8 = smov 16  }
  0x2c   : > { %1269 = dma.hbm_to_vmem [thread:$0]  (!%p1655_p13), %s1651_s9, 1024, %s1659_s11, %s1661_s13, %s1554_s7, %s1554_s7, %s1555_s8  }
  0x2d   : > { %p1195_p9 = scmp.ge.s32.totalorder %s1551_s20, 1  ;;  %p182_p1 = scmp.lt.s32.totalorder %s1551_s20, 3 }
  0x2f   : > { %p183_p3 = pnand %p1195_p9, %p182_p1 }
  0x31   : > { %186 = sbr.rel (%p183_p3) target bundleno = 1150 (0x47e), region = 36 }
  0x36   : > { %s1685_s10 = sand.u32 1, %s1543_s18   ;;  %p2214_p6 = scmp.ne.s32.totalorder %s2210_s27, 0 }
  0x37   : > { %s1196_s14 = sshll.u32 %s1685_s10, 6  ;;  %s189_s15 = scalar_lea.sflag [#allocation4], %s1685_s10 }
  0x38   : > { %s1691_s16 = scalar_lea.vmem [#allocation3], %s1196_s14 }
  0x39   : > { %1530 = dma.done.wait (%p2214_p6), %s189_s15, 1024  }
  0x3a   : > { %1532 = vsyncadd (%p2214_p6), %s189_s15, 4294966272  ;;  %v1556_v0 = vmov 0   ;;  %v223_v1 = vld [vmem:[%s1691_s16 + $0x28] sm:$0xff]  ;;  %v225_v2 = vld [vmem:[%s1691_s16 + $0x38] sm:$0xff]  ;;  %vm306_vm0 = vcmask 261120   ;;  %vm477_vm1 = vcmask 1043456  }
  0x3b   : > { %351 = vmatprep.mubr.bf16.mxu0 %v1556_v0  ;;  %1313 = vset.pattern.permute.xlu0 %v1556_v0  ;;  %v222_v3 = vld [vmem:[%s1691_s16 + $0x20] sm:$0xff]  ;;  %v237_v4 = vpack.c.bf16 %v225_v2, %v223_v1  ;;  %v224_v5 = vld [vmem:[%s1691_s16 + $0x30] sm:$0xff]  ;;  %v219_v6 = vld [vmem:[%s1691_s16 + $0x8] sm:$0xff]  ;;  %vm428_vm2 = vcmask 64512   ;;  %s1064_s30 = sld [smem:[#allocation2]]  ;;  %s1229_s5 = sshll.u32 %s1609_s3, 10 }
  0x3c   : > { %516 = vmatprep.mubr.bf16.mxu1 %v1556_v0  ;;  %v221_v7 = vld [vmem:[%s1691_s16 + $0x18] sm:$0xff]  ;;  %v236_v8 = vpack.c.bf16 %v224_v5, %v222_v3  ;;  %v218_v10 = vld [vmem:[%s1691_s16] sm:$0xff]  ;;  %v220_v11 = vld [vmem:[%s1691_s16 + $0x10] sm:$0xff]  ;;  %s2120_s6 = scalar_lea.vmem [#allocation6], %s1196_s14  ;;  %s2134_s8 = scalar_lea.hbm %s2191_s4, %s1229_s5 }
  0x3d   : > { %v235_v9 = vpack.c.bf16 %v221_v7, %v219_v6  ;;  %331 = vmatprep.subr.bf16.mxu0 %v237_v4  ;;  %v238_v12 = vld [vmem:[%s2189_s2] sm:$0xff]  ;;  %v234_v13 = vpack.c.bf16 %v220_v11, %v218_v10  ;;  %v239_v14 = vld [vmem:[%s2189_s2 + $0x8] sm:$0xff]  ;;  %v1317_v48 = vld [vmem:[%s2188_s1 + $0x10] sm:$0xff]   ;;  %s1116_s7 = sshll.u32 %s2120_s6, 4  ;;  %s1103_s15 = scalar_lea.sflag [#allocation5], %s1685_s10  ;;  %s2136_s7 = int_to_ptr.vmem [resolvable:$true] %s1116_s7 }
  0x3e   : > { %332 = vmatpush1.bf16.msra.mxu0 %v236_v8  ;;  %248 = vperm.xlu0 %1313, %v238_v12   ;;  %v1315_v15 = vld [vmem:[%s2188_s1] sm:$0xff]   ;;  %v1316_v47 = vld [vmem:[%s2188_s1 + $0x8] sm:$0xff]   ;;  %v1318_v49 = vld [vmem:[%s2188_s1 + $0x18] sm:$0xff]   ;;  %s1487_s27 = scalar_lea.vmem %s2136_s7, 1024  ;;  %p2245_p12 = scmp.ne.s32.totalorder %s2211_s28, 0 }
  0x3f   : > { %333 = vmatprep.subr.bf16.mxu0 %v235_v9  ;;  %p1488_p11 = scmp.ne.s32.totalorder %s2136_s7, %s1487_s27  ;;  %s1557_s9 = smov [#allocation6]  }
  0x40   : > { %s1491_s11 = sshll.u32 %s1557_s9, 4  ;;  %s1492_s11 = int_to_ptr.vmem [resolvable:$false] %s1491_s11 }
  0x41   : > { %p1489_p13 = pnand %p1488_p11, %p2245_p12  ;;  %s1493_s12 = scalar_lea.vmem %s1492_s11, 2048 }
  0x42   : > { %334 = vmatpush1.bf16.msra.mxu0 %v234_v13  ;;  %253 = vperm.xlu0 %1313, %v239_v14   ;;  %p1494_p5 = scmp.lt.s32.totalorder %s2136_s7, %s1492_s11  ;;  %p1495_p7 = scmp.lt.s32.totalorder %s1493_s12, %s1487_s27 }
  0x43   : > { %p1490_p4 = pneg %p1489_p13 }
  0x44   : > { %p1496_p8 = por %p1495_p7, %p1494_p5 }
  0x45   : > { %1202 = vmatmul.mubr.msk.bf16.vlgmr.msra.gmra.mxu0 %vm306_vm0, %v1315_v15 }
  0x46   : > { %361 = vmatprep.mubr.bf16.mxu0 %v1556_v0  ;;  %p1497_p10 = pnand %p1496_p8, %p1490_p4 }
  0x4d   : > { %1203 = vmatmul.mubr.msk.bf16.gmra.mxu0 %vm306_vm0, %v1316_v47 }
  0x4e   : > { %371 = vmatprep.mubr.bf16.mxu0 %v1556_v0 }
  0x55   : > { %1204 = vmatmul.mubr.msk.bf16.gmra.mxu0 %vm306_vm0, %v1317_v48 }
  0x56   : > { %381 = vmatprep.mubr.bf16.mxu0 %v1556_v0 }
  0x5d   : > { %1205 = vmatmul.mubr.msk.bf16.gmra.mxu0 %vm306_vm0, %v1318_v49 }
  0xb9   : > { %v249_v16 = vpop.permute.xlu0 %248 }
  0xbd   : > { %v254_v21 = vpop.permute.xlu0 %253 }
 0x105   : > { %v353_v17 = vpop.f32.mrf.mxu0 }
 0x106   : > { %v354_v18 = vadd.f32 %v353_v17, %v249_v16 }
 0x107   : > { %v355_v19 = vpop.f32.mrf.mxu0 }
 0x108   : > { %v392_v20 = vpack.c.bf16 %v354_v18, %v354_v18  ;;  %v356_v29 = vadd.f32 %v355_v19, %v249_v16 }
 0x109   : > { %v357_v22 = vpop.f32.mrf.mxu0 }
 0x10a   : > { %v358_v23 = vadd.f32 %v357_v22, %v254_v21  ;;  %396 = vxpose.xlu1.c.b16.start.end [1/1] (short) %v392_v20, 128  ;;  %v393_v30 = vpack.c.bf16 %v356_v29, %v356_v29 }
 0x10b   : > { %v359_v24 = vpop.f32.mrf.mxu0 }
 0x10c   : > { %v394_v25 = vpack.c.bf16 %v358_v23, %v358_v23  ;;  %v360_v26 = vadd.f32 %v359_v24, %v254_v21 }
 0x10e   : > { %v395_v27 = vpack.c.bf16 %v360_v26, %v360_v26  ;;  %v479_v28 = vsel %vm477_vm1, %v394_v25, 0 }
 0x110   : > { %1206 = vmatprep.subr.msk.bf16.mxu1 %vm477_vm1, %v395_v27 }
 0x111   : > { %499 = vmatpush1.bf16.msra.mxu1 %v479_v28 }
 0x127   : > { %412 = vxpose.xlu1.c.b16.start.end [1/1] (short) %v393_v30, 128 }
 0x12b   : > { %1314 = vset.pattern.permute.xlu1 %v1556_v0 }
 0x16c   : > { %v404_v31 = vpop.trf.xlu1 }
 0x16d   : > { %1207 = vmatmul.mubr.msk.bf16.vlgmr.msra.gmra.mxu1 %vm428_vm2, %v404_v31 }
 0x16e   : > { %526 = vmatprep.mubr.bf16.mxu1 %v1556_v0 }
 0x170   : > { %v405_v32 = vpop.trf.xlu1 }
 0x174   : > { %v406_v33 = vpop.trf.xlu1 }
 0x175   : > { %1208 = vmatmul.mubr.msk.bf16.gmra.mxu1 %vm428_vm2, %v405_v32 }
 0x176   : > { %536 = vmatprep.mubr.bf16.mxu1 %v1556_v0 }
 0x178   : > { %v407_v34 = vpop.trf.xlu1 }
 0x17c   : > { %v408_v35 = vpop.trf.xlu1 }
 0x17d   : > { %1209 = vmatmul.mubr.msk.bf16.gmra.mxu1 %vm428_vm2, %v406_v33 }
 0x17e   : > { %546 = vmatprep.mubr.bf16.mxu1 %v1556_v0 }
 0x180   : > { %v409_v36 = vpop.trf.xlu1 }
 0x184   : > { %v410_v37 = vpop.trf.xlu1 }
 0x185   : > { %1210 = vmatmul.mubr.msk.bf16.gmra.mxu1 %vm428_vm2, %v407_v34 }
 0x186   : > { %556 = vmatprep.mubr.bf16.mxu1 %v1556_v0 }
 0x188   : > { %v411_v38 = vpop.trf.xlu1 }
 0x18c   : > { %v420_v39 = vpop.trf.xlu1 }
 0x18d   : > { %1211 = vmatmul.mubr.msk.bf16.gmra.mxu1 %vm428_vm2, %v408_v35 }
 0x18e   : > { %566 = vmatprep.mubr.bf16.mxu1 %v1556_v0 }
 0x190   : > { %v421_v40 = vpop.trf.xlu1 }
 0x194   : > { %v422_v41 = vpop.trf.xlu1 }
 0x195   : > { %1212 = vmatmul.mubr.msk.bf16.gmra.mxu1 %vm428_vm2, %v409_v36 }
 0x196   : > { %576 = vmatprep.mubr.bf16.mxu1 %v1556_v0 }
 0x198   : > { %v423_v42 = vpop.trf.xlu1 }
 0x19c   : > { %v424_v43 = vpop.trf.xlu1 }
 0x19d   : > { %1213 = vmatmul.mubr.msk.bf16.gmra.mxu1 %vm428_vm2, %v410_v37 }
 0x19e   : > { %586 = vmatprep.mubr.bf16.mxu1 %v1556_v0 }
 0x1a0   : > { %v425_v44 = vpop.trf.xlu1 }
 0x1a4   : > { %v426_v45 = vpop.trf.xlu1 }
 0x1a5   : > { %1214 = vmatmul.mubr.msk.bf16.gmra.mxu1 %vm428_vm2, %v411_v38 }
 0x1a6   : > { %596 = vmatprep.mubr.bf16.mxu1 %v1556_v0 }
 0x1a8   : > { %v427_v46 = vpop.trf.xlu1 }
 0x1ad   : > { %1215 = vmatmul.mubr.msk.bf16.gmra.mxu1 %vm428_vm2, %v420_v39 }
 0x1ae   : > { %606 = vmatprep.mubr.bf16.mxu1 %v1556_v0 }
 0x1b5   : > { %1216 = vmatmul.mubr.msk.bf16.gmra.mxu1 %vm428_vm2, %v421_v40 }
 0x1b6   : > { %616 = vmatprep.mubr.bf16.mxu1 %v1556_v0 }
 0x1bd   : > { %1217 = vmatmul.mubr.msk.bf16.gmra.mxu1 %vm428_vm2, %v422_v41 }
 0x1be   : > { %626 = vmatprep.mubr.bf16.mxu1 %v1556_v0 }
 0x1c5   : > { %1218 = vmatmul.mubr.msk.bf16.gmra.mxu1 %vm428_vm2, %v423_v42 }
 0x1c6   : > { %636 = vmatprep.mubr.bf16.mxu1 %v1556_v0 }
 0x1cd   : > { %1219 = vmatmul.mubr.msk.bf16.gmra.mxu1 %vm428_vm2, %v424_v43 }
 0x1ce   : > { %646 = vmatprep.mubr.bf16.mxu1 %v1556_v0 }
 0x1d5   : > { %1220 = vmatmul.mubr.msk.bf16.gmra.mxu1 %vm428_vm2, %v425_v44 }
 0x1d6   : > { %656 = vmatprep.mubr.bf16.mxu1 %v1556_v0 }
 0x1dd   : > { %1221 = vmatmul.mubr.msk.bf16.gmra.mxu1 %vm428_vm2, %v426_v45 }
 0x1de   : > { %666 = vmatprep.mubr.bf16.mxu1 %v1556_v0 }
 0x1e5   : > { %1222 = vmatmul.mubr.msk.bf16.gmra.mxu1 %vm428_vm2, %v427_v46 }
 0x22d   : > { %v1765_v50 = vpop.f32.mrf.mxu1 }
 0x22e   : > { %2215 = vst [vmem:[#allocation9_spill] sm:$0xff] %v1765_v50 }
 0x22f   : > { %v1767_v51 = vpop.f32.mrf.mxu1 }
 0x230   : > { %2216 = vst [vmem:[#allocation10_spill] sm:$0xff] %v1767_v51 }
 0x231   : > { %v1769_v52 = vpop.f32.mrf.mxu1 }
 0x232   : > { %2217 = vst [vmem:[#allocation11_spill] sm:$0xff] %v1769_v52 }
 0x233   : > { %v1771_v53 = vpop.f32.mrf.mxu1 }
 0x234   : > { %2218 = vst [vmem:[#allocation12_spill] sm:$0xff] %v1771_v53  ;;  %v680_v32 = vmax.f32 %v1769_v52, %v1771_v53 }
 0x235   : > { %v1773_v54 = vpop.f32.mrf.mxu1 }
 0x237   : > { %v1775_v55 = vpop.f32.mrf.mxu1 }
 0x239   : > { %v1777_v56 = vpop.f32.mrf.mxu1 }
 0x23a   : > { %2219 = vst [vmem:[#allocation13_spill] sm:$0xff] %v1777_v56 }
 0x23b   : > { %v1779_v57 = vpop.f32.mrf.mxu1 }
 0x23c   : > { %v686_v28 = vmax.f32 %v1777_v56, %v1779_v57 }
 0x23d   : > { %v1781_v58 = vpop.f32.mrf.mxu1 }
 0x23f   : > { %v1783_v59 = vpop.f32.mrf.mxu1 }
 0x240   : > { %v689_v47 = vmax.f32 %v1781_v58, %v1783_v59 }
 0x241   : > { %v1785_v60 = vpop.f32.mrf.mxu1 }
 0x243   : > { %v1787_v61 = vpop.f32.mrf.mxu1 }
 0x244   : > { %v692_v24 = vmax.f32 %v1785_v60, %v1787_v61 }
 0x245   : > { %v1789_v62 = vpop.f32.mrf.mxu1 }
 0x247   : > { %v1791_v63 = vpop.f32.mrf.mxu1 }
 0x248   : > { %v695_v41 = vmax.f32 %v1789_v62, %v1791_v63 }
 0x249   : > { %v1793_v0 = vpop.f32.mrf.mxu1 }
 0x24b   : > { %v1795_v1 = vpop.f32.mrf.mxu1 }
 0x24c   : > { %v698_v44 = vmax.f32 %v1793_v0, %v1795_v1 }
 0x24d   : > { %v1797_v2 = vpop.f32.mrf.mxu1 }
 0x24f   : > { %v1799_v3 = vpop.f32.mrf.mxu1 }
 0x250   : > { %v701_v35 = vmax.f32 %v1797_v2, %v1799_v3 }
 0x251   : > { %v1801_v4 = vpop.f32.mrf.mxu1 }
 0x253   : > { %v1803_v5 = vpop.f32.mrf.mxu1 }
 0x254   : > { %v704_v38 = vmax.f32 %v1801_v4, %v1803_v5 }
 0x255   : > { %v1805_v6 = vpop.f32.mrf.mxu1 }
 0x257   : > { %v1807_v7 = vpop.f32.mrf.mxu1 }
 0x258   : > { %v707_v27 = vmax.f32 %v1805_v6, %v1807_v7 }
 0x259   : > { %v1809_v8 = vpop.f32.mrf.mxu1 }
 0x25b   : > { %v1811_v9 = vpop.f32.mrf.mxu1 }
 0x25c   : > { %v710_v31 = vmax.f32 %v1809_v8, %v1811_v9 }
 0x25d   : > { %v1813_v10 = vpop.f32.mrf.mxu1 }
 0x25f   : > { %v1815_v11 = vpop.f32.mrf.mxu1 }
 0x260   : > { %v713_v19 = vmax.f32 %v1813_v10, %v1815_v11 }
 0x261   : > { %v1817_v12 = vpop.f32.mrf.mxu1 }
 0x263   : > { %v1819_v13 = vpop.f32.mrf.mxu1 }
 0x264   : > { %v716_v23 = vmax.f32 %v1817_v12, %v1819_v13 }
 0x265   : > { %v1821_v14 = vpop.f32.mrf.mxu1 }
 0x267   : > { %v1823_v15 = vpop.f32.mrf.mxu1 }
 0x268   : > { %v719_v16 = vmax.f32 %v1821_v14, %v1823_v15 }
 0x269   : > { %v1827_v17 = vpop.f32.mrf.mxu1 }
 0x26a   : > { %720 = vmax.xlane.f32.xlu0 %v719_v16  ;;  %v683_v16 = vmax.f32 %v1773_v54, %v1775_v55 }
 0x26b   : > { %v1829_v18 = vpop.f32.mrf.mxu1 }
 0x26c   : > { %v722_v20 = vmax.f32 %v1827_v17, %v1829_v18 }
 0x26d   : > { %v1835_v21 = vpop.f32.mrf.mxu1 }
 0x26e   : > { %2220 = vst [vmem:[#allocation14_spill] sm:$0xff] %v1835_v21  ;;  %714 = vmax.xlane.f32.xlu0 %v713_v19  ;;  %723 = vmax.xlane.f32.xlu1 %v722_v20 }
 0x26f   : > { %v1837_v22 = vpop.f32.mrf.mxu1 }
 0x270   : > { %2221 = vst [vmem:[#allocation15_spill] sm:$0xff] %v1837_v22 }
 0x271   : > { %v1843_v25 = vpop.f32.mrf.mxu1 }
 0x272   : > { %2222 = vst [vmem:[#allocation16_spill] sm:$0xff] %v1843_v25  ;;  %717 = vmax.xlane.f32.xlu0 %v716_v23  ;;  %693 = vmax.xlane.f32.xlu1 %v692_v24  ;;  %v677_v23 = vmax.f32 %v1765_v50, %v1767_v51 }
 0x273   : > { %v1845_v26 = vpop.f32.mrf.mxu1 }
 0x274   : > { %2223 = vst [vmem:[#allocation17_spill] sm:$0xff] %v1845_v26 }
 0x275   : > { %v1851_v29 = vpop.f32.mrf.mxu1 }
 0x276   : > { %2224 = vst [vmem:[#allocation18_spill] sm:$0xff] %v1851_v29  ;;  %708 = vmax.xlane.f32.xlu0 %v707_v27  ;;  %687 = vmax.xlane.f32.xlu1 %v686_v28 }
 0x277   : > { %v1853_v30 = vpop.f32.mrf.mxu1 }
 0x278   : > { %2225 = vst [vmem:[#allocation19_spill] sm:$0xff] %v1853_v30 }
 0x279   : > { %v1859_v33 = vpop.f32.mrf.mxu1 }
 0x27a   : > { %2226 = vst [vmem:[#allocation20_spill] sm:$0xff] %v1859_v33  ;;  %711 = vmax.xlane.f32.xlu0 %v710_v31  ;;  %681 = vmax.xlane.f32.xlu1 %v680_v32 }
 0x27b   : > { %v1861_v34 = vpop.f32.mrf.mxu1 }
 0x27c   : > { %2227 = vst [vmem:[#allocation21_spill] sm:$0xff] %v1861_v34 }
 0x27d   : > { %v1865_v36 = vpop.f32.mrf.mxu1 }
 0x27e   : > { %2228 = vst [vmem:[#allocation22_spill] sm:$0xff] %v1865_v36  ;;  %702 = vmax.xlane.f32.xlu0 %v701_v35 }
 0x27f   : > { %v1867_v37 = vpop.f32.mrf.mxu1 }
 0x281   : > { %v1871_v39 = vpop.f32.mrf.mxu1 }
 0x282   : > { %705 = vmax.xlane.f32.xlu0 %v704_v38 }
 0x283   : > { %v1873_v40 = vpop.f32.mrf.mxu1 }
 0x285   : > { %v1877_v42 = vpop.f32.mrf.mxu1 }
 0x286   : > { %696 = vmax.xlane.f32.xlu0 %v695_v41 }
 0x287   : > { %v1879_v43 = vpop.f32.mrf.mxu1 }
 0x289   : > { %v1883_v45 = vpop.f32.mrf.mxu1 }
 0x28a   : > { %699 = vmax.xlane.f32.xlu0 %v698_v44 }
 0x28b   : > { %v1885_v46 = vpop.f32.mrf.mxu1 }
 0x28d   : > { %v1889_v48 = vpop.f32.mrf.mxu1 }
 0x28e   : > { %690 = vmax.xlane.f32.xlu0 %v689_v47 }
 0x28f   : > { %v1891_v49 = vpop.f32.mrf.mxu1 }
 0x291   : > { %v1895_v19 = vpop.f32.mrf.mxu1 }
 0x292   : > { %684 = vmax.xlane.f32.xlu0 %v683_v16 }
 0x293   : > { %v1897_v20 = vpop.f32.mrf.mxu1 }
 0x295   : > { %v1901_v24 = vpop.f32.mrf.mxu1 }
 0x296   : > { %678 = vmax.xlane.f32.xlu0 %v677_v23 }
 0x297   : > { %v1903_v27 = vpop.f32.mrf.mxu1 }
 0x298   : > { %v755_v56 = vmax.f32 %v1901_v24, %v1903_v27 }
 0x299   : > { %v1905_v28 = vpop.f32.mrf.mxu1 }
 0x29b   : > { %v1907_v31 = vpop.f32.mrf.mxu1 }
 0x29d   : > { %v1909_v32 = vpop.f32.mrf.mxu1 }
 0x29f   : > { %v1911_v35 = vpop.f32.mrf.mxu1 }
 0x2a0   : > { %v761_v50 = vmax.f32 %v1909_v32, %v1911_v35 }
 0x2a1   : > { %v1913_v38 = vpop.f32.mrf.mxu1 }
 0x2a3   : > { %v1915_v41 = vpop.f32.mrf.mxu1 }
 0x2a4   : > { %v764_v51 = vmax.f32 %v1913_v38, %v1915_v41 }
 0x2a5   : > { %v1917_v44 = vpop.f32.mrf.mxu1 }
 0x2a7   : > { %v1919_v47 = vpop.f32.mrf.mxu1 }
 0x2a8   : > { %2229 = vst [vmem:[#allocation23_spill] sm:$0xff] %v1919_v47  ;;  %v767_v16 = vmax.f32 %v1917_v44, %v1919_v47  ;;  %v758_v47 = vmax.f32 %v1905_v28, %v1907_v31 }
 0x2a9   : > { %v1923_v23 = vpop.f32.mrf.mxu1 }
 0x2aa   : > { %768 = vmax.xlane.f32.xlu0 %v767_v16  ;;  %v749_v16 = vmax.f32 %v1889_v48, %v1891_v49 }
 0x2ab   : > { %v1925_v52 = vpop.f32.mrf.mxu1 }
 0x2ac   : > { %v770_v53 = vmax.f32 %v1923_v23, %v1925_v52 }
 0x2ae   : > { %762 = vmax.xlane.f32.xlu0 %v761_v50  ;;  %771 = vmax.xlane.f32.xlu1 %v770_v53  ;;  %v743_v50 = vmax.f32 %v1877_v42, %v1879_v43  ;;  %v752_v53 = vmax.f32 %v1895_v19, %v1897_v20 }
 0x2b2   : > { %756 = vmax.xlane.f32.xlu0 %v755_v56  ;;  %765 = vmax.xlane.f32.xlu1 %v764_v51  ;;  %v737_v56 = vmax.f32 %v1865_v36, %v1867_v37  ;;  %v746_v51 = vmax.f32 %v1883_v45, %v1885_v46 }
 0x2b6   : > { %750 = vmax.xlane.f32.xlu0 %v749_v16  ;;  %759 = vmax.xlane.f32.xlu1 %v758_v47  ;;  %v731_v16 = vmax.f32 %v1851_v29, %v1853_v30  ;;  %v740_v47 = vmax.f32 %v1871_v39, %v1873_v40 }
 0x2ba   : > { %744 = vmax.xlane.f32.xlu0 %v743_v50  ;;  %753 = vmax.xlane.f32.xlu1 %v752_v53  ;;  %v725_v50 = vmax.f32 %v1835_v21, %v1837_v22  ;;  %v734_v53 = vmax.f32 %v1859_v33, %v1861_v34 }
 0x2be   : > { %738 = vmax.xlane.f32.xlu0 %v737_v56  ;;  %747 = vmax.xlane.f32.xlu1 %v746_v51  ;;  %v728_v56 = vmax.f32 %v1843_v25, %v1845_v26  ;;  %v243_v51 = vld [vmem:[%s2189_s2 + $0x28] sm:$0xff] }
 0x2c2   : > { %732 = vmax.xlane.f32.xlu0 %v731_v16  ;;  %741 = vmax.xlane.f32.xlu1 %v740_v47  ;;  %v242_v16 = vld [vmem:[%s2189_s2 + $0x20] sm:$0xff]  ;;  %v244_v47 = vld [vmem:[%s2189_s2 + $0x30] sm:$0xff] }
 0x2c6   : > { %726 = vmax.xlane.f32.xlu0 %v725_v50  ;;  %735 = vmax.xlane.f32.xlu1 %v734_v53  ;;  %v245_v50 = vld [vmem:[%s2189_s2 + $0x38] sm:$0xff]  ;;  %v240_v53 = vld [vmem:[%s2189_s2 + $0x10] sm:$0xff] }
 0x2ca   : > { %729 = vmax.xlane.f32.xlu1 %v728_v56  ;;  %v241_v56 = vld [vmem:[%s2189_s2 + $0x18] sm:$0xff] }
 0x2db   : > { %273 = vperm.xlu1 %1314, %v243_v51  }
 0x2dc   : > { %268 = vperm.xlu0 %1313, %v242_v16  }
 0x2df   : > { %278 = vperm.xlu1 %1314, %v244_v47  }
 0x2e0   : > { %283 = vperm.xlu0 %1313, %v245_v50  }
 0x2e3   : > { %258 = vperm.xlu1 %1314, %v240_v53  }
 0x2e4   : > { %263 = vperm.xlu0 %1313, %v241_v56  }
 0x2f3   : > { %v721_v51 = vpop.xlane.xlu0 %720 }
 0x2f4   : > { %v801_v16 = vsub.f32 %v1821_v14, %v721_v51  ;;  %v802_v21 = vsub.f32 %v1823_v15, %v721_v51 }
 0x2f6   : > { %v893_v29 = vmul.f32 1.442695, %v801_v16  ;;  %v895_v26 = vmul.f32 1.442695, %v802_v21 }
 0x2f7   : > { %v715_v25 = vpop.xlane.xlu0 %714  ;;  %v724_v22 = vpop.xlane.xlu1 %723 }
 0x2f8   : > { %v798_v47 = vsub.f32 %v1815_v11, %v715_v25  ;;  %v803_v50 = vsub.f32 %v1827_v17, %v724_v22  ;;  %v804_v33 = vsub.f32 %v1829_v18, %v724_v22  ;;  %1319 = vpow2.f32 %v893_v29 }
 0x2f9   : > { %1321 = vpow2.f32 %v895_v26  ;;  %v797_v51 = vsub.f32 %v1813_v10, %v715_v25 }
 0x2fa   : > { %v897_v30 = vmul.f32 1.442695, %v803_v50  ;;  %v899_v36 = vmul.f32 1.442695, %v804_v33  ;;  %v887_v53 = vmul.f32 1.442695, %v798_v47 }
 0x2fb   : > { %v718_v34 = vpop.xlane.xlu0 %717  ;;  %v885_v21 = vmul.f32 1.442695, %v797_v51 }
 0x2fc   : > { %v800_v56 = vsub.f32 %v1819_v13, %v718_v34  ;;  %1323 = vpow2.f32 %v897_v30  ;;  %v799_v14 = vsub.f32 %v1817_v12, %v718_v34 }
 0x2fd   : > { %1325 = vpow2.f32 %v899_v36 }
 0x2fe   : > { %v891_v15 = vmul.f32 1.442695, %v800_v56  ;;  %1327 = vpow2.f32 %v887_v53  ;;  %v889_v18 = vmul.f32 1.442695, %v799_v14 }
 0x2ff   : > { %v709_v11 = vpop.xlane.xlu0 %708 }
 0x300   : > { %v794_v17 = vsub.f32 %v1807_v7, %v709_v11  ;;  %1329 = vpow2.f32 %v891_v15  ;;  %v793_v12 = vsub.f32 %v1805_v6, %v709_v11 }
 0x301   : > { %1331 = vpow2.f32 %v889_v18 }
 0x302   : > { %v879_v29 = vmul.f32 1.442695, %v794_v17  ;;  %1333 = vpow2.f32 %v885_v21  ;;  %v877_v16 = vmul.f32 1.442695, %v793_v12  ;;  %v694_v12 = vpop.xlane.xlu1 %693 }
 0x303   : > { %v712_v22 = vpop.xlane.xlu0 %711 }
 0x304   : > { %v796_v33 = vsub.f32 %v1811_v9, %v712_v22  ;;  %v795_v13 = vsub.f32 %v1809_v8, %v712_v22  ;;  %1335 = vpow2.f32 %v879_v29 }
 0x305   : > { %v1320_v30 = vpop.eup %1319 }
 0x306   : > { %v883_v26 = vmul.f32 1.442695, %v796_v33  ;;  %v1322_v7 = vpop.eup %1321  ;;  %v881_v34 = vmul.f32 1.442695, %v795_v13 }
 0x307   : > { %v703_v10 = vpop.xlane.xlu0 %702 }
 0x308   : > { %v790_v25 = vsub.f32 %v1799_v3, %v703_v10  ;;  %1337 = vpow2.f32 %v883_v26  ;;  %v789_v3 = vsub.f32 %v1797_v2, %v703_v10 }
 0x309   : > { %v1324_v36 = vpop.eup %1323  ;;  %1339 = vpow2.f32 %v881_v34 }
 0x30a   : > { %v1326_v50 = vpop.eup %1325  ;;  %v871_v9 = vmul.f32 1.442695, %v790_v25  ;;  %v985_v8 = vpack.c.bf16 %v1324_v36, %v1320_v30  ;;  %1341 = vpow2.f32 %v877_v16  ;;  %v869_v22 = vmul.f32 1.442695, %v789_v3 }
 0x30b   : > { %v706_v47 = vpop.xlane.xlu0 %705  ;;  %v1328_v56 = vpop.eup %1327  ;;  %v986_v14 = vpack.c.bf16 %v1326_v50, %v1322_v7 }
 0x30c   : > { %v792_v53 = vsub.f32 %v1803_v5, %v706_v47  ;;  %v791_v6 = vsub.f32 %v1801_v4, %v706_v47  ;;  %1343 = vpow2.f32 %v871_v9 }
 0x30d   : > { %v1330_v15 = vpop.eup %1329  ;;  %1003 = vmatprep.subr.bf16.mxu0 %v986_v14  ;;  %1230 = vmatprep.subr.bf16.mxu1 %v986_v14 }
 0x30e   : > { %v875_v51 = vmul.f32 1.442695, %v792_v53  ;;  %v984_v17 = vpack.c.bf16 %v1330_v15, %v1328_v56  ;;  %1004 = vmatpush1.bf16.xpose.msra.mxu0 %v985_v8  ;;  %1246 = vmatpush1.bf16.xpose.msra.mxu1 %v985_v8  ;;  %v873_v18 = vmul.f32 1.442695, %v791_v6  ;;  %v1332_v21 = vpop.eup %1331 }
 0x30f   : > { %v697_v11 = vpop.xlane.xlu0 %696  ;;  %v1334_v29 = vpop.eup %1333 }
 0x310   : > { %v786_v5 = vsub.f32 %v1791_v63, %v697_v11  ;;  %1345 = vpow2.f32 %v875_v51  ;;  %1005 = vmatprep.subr.bf16.mxu0 %v984_v17  ;;  %1231 = vmatprep.subr.bf16.mxu1 %v984_v17  ;;  %v983_v30 = vpack.c.bf16 %v1332_v21, %v1334_v29  ;;  %v785_v34 = vsub.f32 %v1789_v62, %v697_v11  ;;  %v688_v62 = vpop.xlane.xlu1 %687 }
 0x311   : > { %v1336_v13 = vpop.eup %1335  ;;  %1347 = vpow2.f32 %v873_v18  ;;  %v783_v51 = vsub.f32 %v1785_v60, %v694_v12  ;;  %v780_v3 = vsub.f32 %v1779_v57, %v688_v62 }
 0x312   : > { %v863_v33 = vmul.f32 1.442695, %v786_v5  ;;  %1349 = vpow2.f32 %v869_v22  ;;  %v861_v9 = vmul.f32 1.442695, %v785_v34 }
 0x313   : > { %v700_v4 = vpop.xlane.xlu0 %699 }
 0x314   : > { %v788_v2 = vsub.f32 %v1795_v1, %v700_v4  ;;  %v787_v10 = vsub.f32 %v1793_v0, %v700_v4  ;;  %1351 = vpow2.f32 %v863_v33  ;;  %v784_v1 = vsub.f32 %v1787_v61, %v694_v12  ;;  %v682_v29 = vpop.xlane.xlu1 %681 }
 0x315   : > { %v1338_v26 = vpop.eup %1337  ;;  %v851_v4 = vmul.f32 1.442695, %v780_v3 }
 0x316   : > { %v867_v25 = vmul.f32 1.442695, %v788_v2  ;;  %v982_v7 = vpack.c.bf16 %v1338_v26, %v1336_v13  ;;  %1006 = vmatpush1.bf16.xpose.msra.mxu0 %v983_v30  ;;  %1247 = vmatpush1.bf16.xpose.msra.mxu1 %v983_v30  ;;  %v865_v16 = vmul.f32 1.442695, %v787_v10  ;;  %v1340_v47 = vpop.eup %1339  ;;  %v859_v56 = vmul.f32 1.442695, %v784_v1 }
 0x317   : > { %v691_v63 = vpop.xlane.xlu0 %690  ;;  %v1342_v50 = vpop.eup %1341  ;;  %v2230_v2 = vld [vmem:[#allocation10_spill] sm:$0xff]  ;;  %v2231_v26 = vld [vmem:[#allocation13_spill] sm:$0xff]  ;;  %v2232_v10 = vld [vmem:[#allocation12_spill] sm:$0xff] }
 0x318   : > { %v782_v36 = vsub.f32 %v1783_v59, %v691_v63  ;;  %1353 = vpow2.f32 %v867_v25  ;;  %1007 = vmatprep.subr.bf16.mxu0 %v982_v7  ;;  %1232 = vmatprep.subr.bf16.mxu1 %v982_v7  ;;  %v781_v15 = vsub.f32 %v1781_v58, %v691_v63  ;;  %v981_v6 = vpack.c.bf16 %v1340_v47, %v1342_v50  ;;  %v2233_v47 = vld [vmem:[#allocation9_spill] sm:$0xff] }
 0x319   : > { %v1344_v8 = vpop.eup %1343  ;;  %1355 = vpow2.f32 %v865_v16  ;;  %v857_v58 = vmul.f32 1.442695, %v783_v51  ;;  %v779_v12 = vsub.f32 %v2231_v26, %v688_v62  ;;  %v776_v25 = vsub.f32 %v2232_v10, %v682_v29  ;;  %v2235_v51 = vld [vmem:[#allocation23_spill] sm:$0xff]  ;;  %v2012_v26 = vpop.f32.mrf.mxu0 }
 0x31a   : > { %v855_v0 = vmul.f32 1.442695, %v782_v36  ;;  %v853_v11 = vmul.f32 1.442695, %v781_v15 }
 0x31b   : > { %v685_v53 = vpop.xlane.xlu0 %684  ;;  %v843_v1 = vmul.f32 1.442695, %v776_v25 }
 0x31c   : > { %1357 = vpow2.f32 %v855_v0  ;;  %v778_v59 = vsub.f32 %v1775_v55, %v685_v53  ;;  %v777_v60 = vsub.f32 %v1773_v54, %v685_v53  ;;  %v849_v54 = vmul.f32 1.442695, %v779_v12  ;;  %v2234_v53 = vld [vmem:[#allocation11_spill] sm:$0xff] }
 0x31d   : > { %v1346_v14 = vpop.eup %1345  ;;  %1359 = vpow2.f32 %v861_v9 }
 0x31e   : > { %v980_v61 = vpack.c.bf16 %v1346_v14, %v1344_v8  ;;  %1008 = vmatpush1.bf16.xpose.msra.mxu0 %v981_v6  ;;  %1248 = vmatpush1.bf16.xpose.msra.mxu1 %v981_v6  ;;  %1361 = vpow2.f32 %v859_v56  ;;  %v1348_v17 = vpop.eup %1347  ;;  %v847_v5 = vmul.f32 1.442695, %v778_v59  ;;  %v845_v30 = vmul.f32 1.442695, %v777_v60 }
 0x31f   : > { %v1350_v18 = vpop.eup %1349  ;;  %v679_v21 = vpop.xlane.xlu0 %678  ;;  %1363 = vpow2.f32 %v853_v11  ;;  %v775_v8 = vsub.f32 %v2234_v53, %v682_v29 }
 0x320   : > { %1009 = vmatprep.subr.bf16.mxu0 %v980_v61  ;;  %1233 = vmatprep.subr.bf16.mxu1 %v980_v61  ;;  %v979_v33 = vpack.c.bf16 %v1348_v17, %v1350_v18  ;;  %1365 = vpow2.f32 %v847_v5  ;;  %v774_v13 = vsub.f32 %v2230_v2, %v679_v21  ;;  %v773_v0 = vsub.f32 %v2233_v47, %v679_v21 }
 0x321   : > { %v1352_v22 = vpop.eup %1351  ;;  %1367 = vpow2.f32 %v857_v58  ;;  %v841_v6 = vmul.f32 1.442695, %v775_v8 }
 0x322   : > { %1369 = vpow2.f32 %v851_v4  ;;  %v839_v7 = vmul.f32 1.442695, %v774_v13  ;;  %v837_v56 = vmul.f32 1.442695, %v773_v0 }
 0x323   : > { %1371 = vpow2.f32 %v845_v30 }
 0x324   : > { %1373 = vpow2.f32 %v839_v7 }
 0x325   : > { %v1354_v55 = vpop.eup %1353  ;;  %1375 = vpow2.f32 %v849_v54 }
 0x326   : > { %v978_v57 = vpack.c.bf16 %v1354_v55, %v1352_v22  ;;  %1010 = vmatpush1.bf16.xpose.msra.mxu0 %v979_v33  ;;  %1249 = vmatpush1.bf16.xpose.msra.mxu1 %v979_v33  ;;  %v1356_v63 = vpop.eup %1355  ;;  %1377 = vpow2.f32 %v843_v1 }
 0x327   : > { %1379 = vpow2.f32 %v837_v56 }
 0x328   : > { %1011 = vmatprep.subr.bf16.mxu0 %v978_v57  ;;  %1234 = vmatprep.subr.bf16.mxu1 %v978_v57  ;;  %1381 = vpow2.f32 %v841_v6 }
 0x329   : > { %v1358_v34 = vpop.eup %1357 }
 0x32a   : > { %v1360_v36 = vpop.eup %1359 }
 0x32b   : > { %v1362_v16 = vpop.eup %1361  ;;  %v977_v50 = vpack.c.bf16 %v1356_v63, %v1360_v36  ;;  %v2019_v36 = vpop.f32.mrf.mxu0 }
 0x32c   : > { %v976_v9 = vpack.c.bf16 %v1362_v16, %v1358_v34  ;;  %v1364_v14 = vpop.eup %1363 }
 0x32d   : > { %v1366_v15 = vpop.eup %1365 }
 0x32e   : > { %1012 = vmatpush1.bf16.xpose.msra.mxu0 %v977_v50  ;;  %1250 = vmatpush1.bf16.xpose.msra.mxu1 %v977_v50  ;;  %v1368_v61 = vpop.eup %1367 }
 0x32f   : > { %1013 = vmatprep.subr.bf16.mxu0 %v976_v9  ;;  %1235 = vmatprep.subr.bf16.mxu1 %v976_v9  ;;  %v1370_v11 = vpop.eup %1369  ;;  %v975_v17 = vpack.c.bf16 %v1368_v61, %v1364_v14 }
 0x330   : > { %v974_v5 = vpack.c.bf16 %v1370_v11, %v1366_v15  ;;  %v1372_v60 = vpop.eup %1371 }
 0x331   : > { %v1374_v57 = vpop.eup %1373 }
 0x332   : > { %v1376_v12 = vpop.eup %1375 }
 0x333   : > { %v769_v62 = vpop.xlane.xlu0 %768  ;;  %v1378_v10 = vpop.eup %1377  ;;  %v973_v30 = vpack.c.bf16 %v1376_v12, %v1372_v60 }
 0x334   : > { %v833_v59 = vsub.f32 %v1917_v44, %v769_v62  ;;  %v834_v3 = vsub.f32 %v2235_v51, %v769_v62  ;;  %v972_v63 = vpack.c.bf16 %v1378_v10, %v1374_v57  ;;  %v1380_v16 = vpop.eup %1379 }
 0x335   : > { %v1382_v53 = vpop.eup %1381 }
 0x336   : > { %v957_v21 = vmul.f32 1.442695, %v833_v59  ;;  %1014 = vmatpush1.bf16.xpose.msra.mxu0 %v975_v17  ;;  %1251 = vmatpush1.bf16.xpose.msra.mxu1 %v975_v17  ;;  %v959_v4 = vmul.f32 1.442695, %v834_v3  ;;  %v971_v56 = vpack.c.bf16 %v1382_v53, %v1380_v16 }
 0x337   : > { %v763_v18 = vpop.xlane.xlu0 %762  ;;  %v772_v58 = vpop.xlane.xlu1 %771  ;;  %1015 = vmatprep.subr.bf16.mxu0 %v974_v5  ;;  %1236 = vmatprep.subr.bf16.mxu1 %v974_v5 }
 0x338   : > { %v835_v22 = vsub.f32 %v1923_v23, %v772_v58  ;;  %v836_v44 = vsub.f32 %v1925_v52, %v772_v58  ;;  %v830_v55 = vsub.f32 %v1911_v35, %v763_v18  ;;  %1383 = vpow2.f32 %v957_v21 }
 0x339   : > { %1385 = vpow2.f32 %v959_v4  ;;  %v829_v54 = vsub.f32 %v1909_v32, %v763_v18  ;;  %v2025_v32 = vpop.f32.mrf.mxu0 }
 0x33a   : > { %v961_v29 = vmul.f32 1.442695, %v835_v22  ;;  %v963_v33 = vmul.f32 1.442695, %v836_v44  ;;  %v951_v25 = vmul.f32 1.442695, %v830_v55 }
 0x33b   : > { %v757_v2 = vpop.xlane.xlu0 %756  ;;  %v766_v13 = vpop.xlane.xlu1 %765  ;;  %v949_v9 = vmul.f32 1.442695, %v829_v54 }
 0x33c   : > { %v832_v23 = vsub.f32 %v1915_v41, %v766_v13  ;;  %1387 = vpow2.f32 %v961_v29  ;;  %v831_v52 = vsub.f32 %v1913_v38, %v766_v13  ;;  %v826_v41 = vsub.f32 %v1903_v27, %v757_v2  ;;  %v2034_v6 = vpop.f32.mrf.mxu0 }
 0x33d   : > { %1389 = vpow2.f32 %v963_v33  ;;  %v825_v15 = vsub.f32 %v1901_v24, %v757_v2 }
 0x33e   : > { %v955_v35 = vmul.f32 1.442695, %v832_v23  ;;  %1016 = vmatpush1.bf16.xpose.msra.mxu0 %v973_v30  ;;  %1252 = vmatpush1.bf16.xpose.msra.mxu1 %v973_v30  ;;  %1391 = vpow2.f32 %v951_v25  ;;  %v953_v38 = vmul.f32 1.442695, %v831_v52  ;;  %v943_v8 = vmul.f32 1.442695, %v826_v41  ;;  %v2040_v18 = vpop.f32.mrf.mxu0 }
 0x33f   : > { %v2016_v7 = vpop.xlane.xlu0 %750  ;;  %v760_v34 = vpop.xlane.xlu1 %759  ;;  %1017 = vmatprep.subr.bf16.mxu0 %v972_v63  ;;  %1237 = vmatprep.subr.bf16.mxu1 %v972_v63  ;;  %v941_v5 = vmul.f32 1.442695, %v825_v15 }
 0x340   : > { %v828_v1 = vsub.f32 %v1907_v31, %v760_v34  ;;  %1393 = vpow2.f32 %v955_v35  ;;  %v827_v27 = vsub.f32 %v1905_v28, %v760_v34  ;;  %v822_v28 = vsub.f32 %v1891_v49, %v2016_v7  ;;  %v375_v33 = vpop.f32.mrf.mxu0 }
 0x341   : > { %1395 = vpow2.f32 %v953_v38  ;;  %v821_v60 = vsub.f32 %v1889_v48, %v2016_v7 }
 0x342   : > { %v947_v47 = vmul.f32 1.442695, %v828_v1  ;;  %v945_v51 = vmul.f32 1.442695, %v827_v27  ;;  %v935_v24 = vmul.f32 1.442695, %v822_v28  ;;  %v2057_v48 = vpop.f32.mrf.mxu0 }
 0x343   : > { %v2023_v0 = vpop.xlane.xlu0 %744  ;;  %v754_v50 = vpop.xlane.xlu1 %753  ;;  %v933_v25 = vmul.f32 1.442695, %v821_v60 }
 0x344   : > { %1397 = vpow2.f32 %v947_v47  ;;  %v824_v31 = vsub.f32 %v1897_v20, %v754_v50  ;;  %v823_v4 = vsub.f32 %v1895_v19, %v754_v50  ;;  %v818_v19 = vsub.f32 %v1879_v43, %v2023_v0  ;;  %v379_v38 = vpop.f32.mrf.mxu0 }
 0x345   : > { %1399 = vpow2.f32 %v949_v9  ;;  %v1384_v59 = vpop.eup %1383  ;;  %v817_v1 = vsub.f32 %v1877_v42, %v2023_v0 }
 0x346   : > { %1018 = vmatpush1.bf16.xpose.msra.mxu0 %v971_v56  ;;  %1253 = vmatpush1.bf16.xpose.msra.mxu1 %v971_v56  ;;  %1401 = vpow2.f32 %v943_v8  ;;  %v1386_v61 = vpop.eup %1385  ;;  %v939_v20 = vmul.f32 1.442695, %v824_v31  ;;  %v937_v13 = vmul.f32 1.442695, %v823_v4  ;;  %v927_v30 = vmul.f32 1.442695, %v818_v19 }
 0x347   : > { %v2029_v14 = vpop.xlane.xlu0 %738  ;;  %v2031_v62 = vpop.xlane.xlu1 %747  ;;  %1403 = vpow2.f32 %v945_v51  ;;  %v925_v27 = vmul.f32 1.442695, %v817_v1 }
 0x348   : > { %1405 = vpow2.f32 %v939_v20  ;;  %v820_v49 = vsub.f32 %v1885_v46, %v2031_v62  ;;  %v819_v43 = vsub.f32 %v1883_v45, %v2031_v62  ;;  %v814_v45 = vsub.f32 %v1867_v37, %v2029_v14  ;;  %v2237_v20 = vld [vmem:[#allocation22_spill] sm:$0xff] }
 0x349   : > { %v1388_v3 = vpop.eup %1387  ;;  %1407 = vpow2.f32 %v941_v5 }
 0x34a   : > { %v1390_v17 = vpop.eup %1389  ;;  %v1001_v22 = vpack.c.bf16 %v1388_v3, %v1384_v59  ;;  %1409 = vpow2.f32 %v935_v24  ;;  %v931_v46 = vmul.f32 1.442695, %v820_v49  ;;  %v929_v47 = vmul.f32 1.442695, %v819_v43  ;;  %v2236_v59 = vld [vmem:[#allocation21_spill] sm:$0xff] }
 0x34b   : > { %v2038_v11 = vpop.xlane.xlu1 %741  ;;  %v2042_v58 = vpop.xlane.xlu0 %732  ;;  %v1002_v21 = vpack.c.bf16 %v1390_v17, %v1386_v61  ;;  %1411 = vpow2.f32 %v937_v13  ;;  %v919_v31 = vmul.f32 1.442695, %v814_v45  ;;  %v813_v17 = vsub.f32 %v2237_v20, %v2029_v14  ;;  %v2240_v13 = vld [vmem:[#allocation17_spill] sm:$0xff] }
 0x34c   : > { %v1392_v44 = vpop.eup %1391  ;;  %1413 = vpow2.f32 %v931_v46  ;;  %v816_v7 = vsub.f32 %v1873_v40, %v2038_v11  ;;  %v815_v37 = vsub.f32 %v1871_v39, %v2038_v11  ;;  %v2238_v39 = vld [vmem:[#allocation19_spill] sm:$0xff]  ;;  %v2241_v46 = vld [vmem:[#allocation18_spill] sm:$0xff] }
 0x34d   : > { %1019 = vmatprep.subr.bf16.mxu0 %v1002_v21  ;;  %1238 = vmatprep.subr.bf16.mxu1 %v1002_v21  ;;  %v1394_v29 = vpop.eup %1393  ;;  %1415 = vpow2.f32 %v933_v25  ;;  %v810_v11 = vsub.f32 %v2238_v39, %v2042_v58  ;;  %v917_v14 = vmul.f32 1.442695, %v813_v17  ;;  %v2242_v25 = vld [vmem:[#allocation15_spill] sm:$0xff] }
 0x34e   : > { %1020 = vmatpush2.bf16.xpose.msra.mxu0 %v1001_v22  ;;  %1254 = vmatpush2.bf16.xpose.msra.mxu1 %v1001_v22  ;;  %v1000_v2 = vpack.c.bf16 %v1394_v29, %v1392_v44  ;;  %v1396_v57 = vpop.eup %1395  ;;  %1417 = vpow2.f32 %v927_v30  ;;  %v923_v9 = vmul.f32 1.442695, %v816_v7  ;;  %v921_v21 = vmul.f32 1.442695, %v815_v37 }
 0x34f   : > { %v2047_v55 = vpop.xlane.xlu1 %735  ;;  %v2053_v12 = vpop.xlane.xlu0 %726  ;;  %1419 = vpow2.f32 %v929_v47  ;;  %v911_v60 = vmul.f32 1.442695, %v810_v11 }
 0x350   : > { %1021 = vmatprep.subr.bf16.mxu0 %v1000_v2  ;;  %1239 = vmatprep.subr.bf16.mxu1 %v1000_v2  ;;  %1421 = vpow2.f32 %v923_v9  ;;  %v812_v28 = vsub.f32 %v2236_v59, %v2047_v55 }
 0x351   : > { %v1398_v10 = vpop.eup %1397  ;;  %1423 = vpow2.f32 %v925_v27 }
 0x352   : > { %v1400_v52 = vpop.eup %1399  ;;  %1425 = vpow2.f32 %v919_v31  ;;  %v915_v4 = vmul.f32 1.442695, %v812_v28 }
 0x353   : > { %v2055_v23 = vpop.xlane.xlu1 %729  ;;  %v1402_v35 = vpop.eup %1401  ;;  %v999_v63 = vpack.c.bf16 %v1396_v57, %v1400_v52  ;;  %1427 = vpow2.f32 %v921_v21  ;;  %v806_v52 = vsub.f32 %v2242_v25, %v2053_v12 }
 0x354   : > { %v998_v34 = vpack.c.bf16 %v1398_v10, %v1402_v35  ;;  %v1404_v50 = vpop.eup %1403  ;;  %1429 = vpow2.f32 %v915_v4  ;;  %v808_v57 = vsub.f32 %v2240_v13, %v2055_v23  ;;  %v809_v10 = vsub.f32 %v2241_v46, %v2042_v58 }
 0x355   : > { %v1406_v0 = vpop.eup %1405  ;;  %1431 = vpow2.f32 %v917_v14 }
 0x356   : > { %1022 = vmatpush2.bf16.xpose.msra.mxu0 %v999_v63  ;;  %1255 = vmatpush2.bf16.xpose.msra.mxu1 %v999_v63  ;;  %v1408_v56 = vpop.eup %1407  ;;  %1433 = vpow2.f32 %v911_v60  ;;  %v907_v35 = vmul.f32 1.442695, %v808_v57  ;;  %v909_v63 = vmul.f32 1.442695, %v809_v10 }
 0x357   : > { %v2063_v54 = vpop.permute.xlu0 %268  ;;  %v2065_v41 = vpop.permute.xlu1 %273  ;;  %1023 = vmatprep.subr.bf16.mxu0 %v998_v34  ;;  %1240 = vmatprep.subr.bf16.mxu1 %v998_v34  ;;  %v997_v15 = vpack.c.bf16 %v1404_v50, %v1408_v56  ;;  %v903_v34 = vmul.f32 1.442695, %v806_v52 }
 0x358   : > { %v376_v16 = vadd.f32 %v375_v33, %v2063_v54  ;;  %v380_v40 = vadd.f32 %v379_v38, %v2065_v41  ;;  %v1410_v62 = vpop.eup %1409  ;;  %v2243_v38 = vld [vmem:[#allocation16_spill] sm:$0xff]  ;;  %v374_v21 = vadd.f32 %v2040_v18, %v2063_v54 }
 0x359   : > { %v996_v61 = vpack.c.bf16 %v1406_v0, %v1410_v62  ;;  %v1412_v22 = vpop.eup %1411  ;;  %v807_v58 = vsub.f32 %v2243_v38, %v2055_v23  ;;  %v383_v62 = vpop.f32.mrf.mxu0 }
 0x35a   : > { %v968_v53 = vpack.c.bf16 %v380_v40, %v376_v16  ;;  %v1414_v49 = vpop.eup %1413  ;;  %v2244_v40 = vld [vmem:[#allocation14_spill] sm:$0xff] }
 0x35b   : > { %v2073_v8 = vpop.permute.xlu0 %283  ;;  %v2075_v42 = vpop.permute.xlu1 %278  ;;  %v805_v47 = vsub.f32 %v2244_v40, %v2053_v12  ;;  %v905_v50 = vmul.f32 1.442695, %v807_v58  ;;  %v1451_v58 = vld [vmem:[%s1691_s16] sm:$0xff] }
 0x35c   : > { %1045 = vmatprep.mubr.bf16.mxu1 %v968_v53  ;;  %v1416_v29 = vpop.eup %1415 }
 0x35d   : > { %v1418_v33 = vpop.eup %1417  ;;  %v995_v2 = vpack.c.bf16 %v1412_v22, %v1416_v29  ;;  %v901_v0 = vmul.f32 1.442695, %v805_v47  ;;  %v378_v22 = vadd.f32 %v2057_v48, %v2065_v41  ;;  %v384_v48 = vadd.f32 %v383_v62, %v2075_v42  ;;  %v1453_v47 = vld [vmem:[%s1691_s16 + $0x20] sm:$0xff]  ;;  %v1456_v62 = vld [vmem:[%s1691_s16 + $0x18] sm:$0xff] }
 0x35e   : > { %1024 = vmatpush2.bf16.xpose.msra.mxu0 %v997_v15  ;;  %1256 = vmatpush2.bf16.xpose.msra.mxu1 %v997_v15 }
 0x35f   : > { %v2081_v51 = vpop.permute.xlu0 %263  ;;  %v2083_v3 = vpop.permute.xlu1 %258  ;;  %1025 = vmatprep.subr.bf16.mxu0 %v996_v61  ;;  %1241 = vmatprep.subr.bf16.mxu1 %v996_v61  ;;  %v967_v29 = vpack.c.bf16 %v378_v22, %v374_v21 }
 0x360   : > { %v370_v5 = vadd.f32 %v2034_v6, %v2081_v51  ;;  %v366_v24 = vadd.f32 %v2019_v36, %v2083_v3  ;;  %v2239_v6 = vld [vmem:[#allocation20_spill] sm:$0xff]  ;;  %v994_v36 = vpack.c.bf16 %v1414_v49, %v1418_v33  ;;  %v385_v61 = vpop.f32.mrf.mxu0  ;;  %v368_v4 = vadd.f32 %v2025_v32, %v2081_v51 }
 0x361   : > { %v811_v19 = vsub.f32 %v2239_v6, %v2047_v55  ;;  %v1420_v55 = vpop.eup %1419  ;;  %v386_v14 = vadd.f32 %v385_v61, %v2075_v42 }
 0x362   : > { %v966_v44 = vpack.c.bf16 %v370_v5, %v366_v24  ;;  %v1422_v43 = vpop.eup %1421  ;;  %v387_v5 = vpop.f32.mrf.mxu0 }
 0x363   : > { %v913_v30 = vmul.f32 1.442695, %v811_v19  ;;  %v1424_v7 = vpop.eup %1423  ;;  %v388_v18 = vadd.f32 %v387_v5, %v2073_v8 }
 0x364   : > { %1035 = vmatprep.mubr.bf16.mxu0 %v966_v44  ;;  %v1426_v1 = vpop.eup %1425  ;;  %v993_v16 = vpack.c.bf16 %v1420_v55, %v1424_v7  ;;  %v389_v24 = vpop.f32.mrf.mxu0  ;;  %v364_v44 = vadd.f32 %v2012_v26, %v2083_v3 }
 0x365   : > { %1435 = vpow2.f32 %v913_v30  ;;  %v992_v45 = vpack.c.bf16 %v1422_v43, %v1426_v1  ;;  %v1428_v9 = vpop.eup %1427  ;;  %v390_v49 = vadd.f32 %v389_v24, %v2073_v8  ;;  %v969_v54 = vpack.c.bf16 %v388_v18, %v384_v48 }
 0x366   : > { %1026 = vmatpush2.bf16.xpose.msra.mxu0 %v995_v2  ;;  %1257 = vmatpush2.bf16.xpose.msra.mxu1 %v995_v2  ;;  %1437 = vpow2.f32 %v907_v35  ;;  %v1430_v53 = vpop.eup %1429  ;;  %v965_v60 = vpack.c.bf16 %v368_v4, %v364_v44  ;;  %v1070_v2 = vlaneseq  ;;  %v1067_v8 = vstv %s1064_s30 }
 0x367   : > { %1027 = vmatprep.subr.bf16.mxu0 %v994_v36  ;;  %1242 = vmatprep.subr.bf16.mxu1 %v994_v36  ;;  %1439 = vpow2.f32 %v909_v63  ;;  %v1432_v27 = vpop.eup %1431  ;;  %v970_v33 = vpack.c.bf16 %v390_v49, %v386_v14 }
 0x368   : > { %1441 = vpow2.f32 %v903_v34  ;;  %v1434_v56 = vpop.eup %1433  ;;  %v991_v23 = vpack.c.bf16 %v1428_v9, %v1432_v27  ;;  %v1071_v36 = vshrl.u32 %v1070_v2, 7  ;;  %v1454_v9 = vld [vmem:[%s1691_s16 + $0x30] sm:$0xff] }
 0x369   : > { %1443 = vpow2.f32 %v905_v50  ;;  %v990_v31 = vpack.c.bf16 %v1430_v53, %v1434_v56 }
 0x36a   : > { %1445 = vpow2.f32 %v901_v0  ;;  %v1072_v46 = vsub.s32 0, %v1071_v36 }
 0x36e   : > { %1028 = vmatpush2.bf16.xpose.msra.mxu0 %v993_v16  ;;  %1258 = vmatpush2.bf16.xpose.msra.mxu1 %v993_v16 }
 0x36f   : > { %1029 = vmatprep.subr.bf16.mxu0 %v992_v45  ;;  %1243 = vmatprep.subr.bf16.mxu1 %v992_v45  ;;  %v1452_v45 = vld [vmem:[%s1691_s16 + $0x10] sm:$0xff] }
 0x372   : > { %v1436_v12 = vpop.eup %1435 }
 0x373   : > { %v1438_v37 = vpop.eup %1437 }
 0x374   : > { %v1440_v15 = vpop.eup %1439 }
 0x375   : > { %v1442_v59 = vpop.eup %1441  ;;  %v989_v28 = vpack.c.bf16 %v1436_v12, %v1440_v15  ;;  %v1457_v15 = vld [vmem:[%s1691_s16 + $0x28] sm:$0xff] }
 0x376   : > { %1030 = vmatpush2.bf16.xpose.msra.mxu0 %v991_v23  ;;  %1259 = vmatpush2.bf16.xpose.msra.mxu1 %v991_v23  ;;  %v988_v20 = vpack.c.bf16 %v1438_v37, %v1442_v59  ;;  %v1444_v17 = vpop.eup %1443 }
 0x377   : > { %1031 = vmatprep.subr.bf16.mxu0 %v990_v31  ;;  %1244 = vmatprep.subr.bf16.mxu1 %v990_v31  ;;  %v1446_v39 = vpop.eup %1445  ;;  %v1455_v31 = vld [vmem:[%s1691_s16 + $0x8] sm:$0xff] }
 0x378   : > { %v987_v11 = vpack.c.bf16 %v1444_v17, %v1446_v39 }
 0x37e   : > { %1032 = vmatpush2.bf16.xpose.msra.mxu0 %v989_v28  ;;  %1260 = vmatpush2.bf16.xpose.msra.mxu1 %v989_v28  ;;  %v1458_v28 = vld [vmem:[%s1691_s16 + $0x38] sm:$0xff] }
 0x37f   : > { %1033 = vmatprep.subr.bf16.mxu0 %v988_v20  ;;  %1245 = vmatprep.subr.bf16.mxu1 %v988_v20 }
 0x386   : > { %1034 = vmatpush2.bf16.xpose.msra.mxu0 %v987_v11  ;;  %1261 = vmatpush2.bf16.xpose.msra.mxu1 %v987_v11 }
 0x38d   : > { %1036 = vmatmul.mubr.bf16.vlgmr.msra.gmra.mxu0 %v965_v60  ;;  %1046 = vmatmul.mubr.bf16.vlgmr.msra.gmra.mxu1 %v967_v29 }
 0x38e   : > { %1055 = vmatprep.mubr.bf16.mxu1 %v970_v33 }
 0x395   : > { %1056 = vmatmul.mubr.bf16.gmra.mxu1 %v969_v54 }
 0x44d   : > { %v1047_v32 = vpop.f32.mrf.mxu1  ;;  %v1037_v57 = vpop.f32.mrf.mxu0 }
 0x44f   : > { %v1049_v41 = vpop.f32.mrf.mxu1  ;;  %v1039_v42 = vpop.f32.mrf.mxu0 }
 0x451   : > { %v1051_v51 = vpop.f32.mrf.mxu1  ;;  %v1041_v30 = vpop.f32.mrf.mxu0 }
 0x453   : > { %v1053_v26 = vpop.f32.mrf.mxu1  ;;  %v1043_v38 = vpop.f32.mrf.mxu0 }
 0x455   : > { %v1057_v3 = vpop.f32.mrf.mxu1 }
 0x456   : > { %1447 = vrcp.f32 %v1057_v3 }
 0x457   : > { %v1059_v6 = vpop.f32.mrf.mxu1 }
 0x458   : > { %1449 = vrcp.f32 %v1059_v6 }
 0x459   : > { %v1061_v19 = vpop.f32.mrf.mxu1 }
 0x45b   : > { %v1062_v13 = vpop.f32.mrf.mxu1 }
 0x463   : > { %v1448_v10 = vpop.eup %1447 }
 0x464   : > { %v1068_v25 = vmul.f32 %v1448_v10, %v1067_v8 }
 0x465   : > { %v1450_v52 = vpop.eup %1449 }
 0x466   : > { %v1073_v55 = vrot.slane %v1068_v25, %v1072_v46  ;;  %v1069_v35 = vmul.f32 %v1450_v52, %v1067_v8 }
 0x468   : > { %v1078_v43 = vmul.f32 %v1073_v55, %v1037_v57  ;;  %v1080_v63 = vmul.f32 %v1073_v55, %v1041_v30  ;;  %v1082_v7 = vmul.f32 %v1073_v55, %v1047_v32  ;;  %v1084_v34 = vmul.f32 %v1073_v55, %v1051_v51 }
 0x469   : > { %v1077_v1 = vrot.slane %v1069_v35, %v1072_v46 }
 0x46a   : > { %v1086_v16 = vadd.f32 %v1451_v58, %v1078_v43  ;;  %v1088_v40 = vadd.f32 %v1452_v45, %v1080_v63  ;;  %v1090_v50 = vadd.f32 %v1453_v47, %v1082_v7  ;;  %v1092_v53 = vadd.f32 %v1454_v9, %v1084_v34 }
 0x46b   : > { %v1079_v0 = vmul.f32 %v1077_v1, %v1039_v42  ;;  %v1081_v27 = vmul.f32 %v1077_v1, %v1043_v38  ;;  %v1083_v56 = vmul.f32 %v1077_v1, %v1049_v41  ;;  %v1085_v23 = vmul.f32 %v1077_v1, %v1053_v26 }
 0x46c   : > { %1094 = vst [vmem:[%s2120_s6] sm:$0xff] %v1086_v16  ;;  %1096 = vst [vmem:[%s2120_s6 + $0x10] sm:$0xff] %v1088_v40 }
 0x46d   : > { %1098 = vst [vmem:[%s2120_s6 + $0x20] sm:$0xff] %v1090_v50  ;;  %1100 = vst [vmem:[%s2120_s6 + $0x30] sm:$0xff] %v1092_v53  ;;  %v1087_v12 = vadd.f32 %v1455_v31, %v1079_v0  ;;  %v1089_v37 = vadd.f32 %v1456_v62, %v1081_v27  ;;  %v1091_v59 = vadd.f32 %v1457_v15, %v1083_v56 }
 0x46e   : > { %v1093_v61 = vadd.f32 %v1458_v28, %v1085_v23 }
 0x46f   : > { %1095 = vst [vmem:[%s2120_s6 + $0x8] sm:$0xff] %v1087_v12  ;;  %1097 = vst [vmem:[%s2120_s6 + $0x18] sm:$0xff] %v1089_v37 }
 0x470   : > { %1099 = vst [vmem:[%s2120_s6 + $0x28] sm:$0xff] %v1091_v59  ;;  %1101 = vst [vmem:[%s2120_s6 + $0x38] sm:$0xff] %v1093_v61 }
 0x471   : > { %1500 = shalt.err (!%p1497_p10)
}
 0x472   : > { %s1501_s16 = scalar_lea.hbm %s2134_s8, 1024  ;;  %s1505_s23 = scalar_lea.hbm %s2191_s4, 2048 }
 0x473   : > { %p1502_p0 = scmp.ne.s32.totalorder %s2134_s8, %s1501_s16  ;;  %p1506_p1 = scmp.lt.s32.totalorder %s2134_s8, %s2191_s4 }
 0x474   : > { %p1507_p3 = scmp.lt.s32.totalorder %s1505_s23, %s1501_s16 }
 0x475   : > { %p1503_p2 = pnand %p1502_p0, %p2245_p12 }
 0x476   : > { %p1508_p6 = por %p1507_p3, %p1506_p1 }
 0x477   : > { %p1504_p9 = pneg %p1503_p2 }
 0x479   : > { %p1509_p11 = pnand %p1508_p6, %p1504_p9 }
 0x47b   : > { %1512 = shalt.err (!%p1509_p11)
}
 0x47c   : > { %s1558_s30 = smov 256   ;;  %s1559_s5 = smov 16  }
 0x47d   : > { %1264 = dma.vmem_to_hbm [thread:$0]  (%p2245_p12), %s2136_s7, 1024, %s2134_s8, %s1103_s15, %s1558_s30, %s1558_s30, %s1559_s5  }
 0x47e PF: > { %s1131_s6 = sand.u32 1, %s1539_s17   ;;  %p2246_p13 = scmp.ne.s32.totalorder %s2212_s29, 0 }
 0x47f   : > { %p2247_p4 = scmp.ge.s32.totalorder %s1551_s20, 2  ;;  %s1132_s3 = scalar_lea.sflag [#allocation5], %s1131_s6 }
 0x481   : > { %p1271_p5 = pnand %p2247_p4, %p2246_p13 }
 0x483   : > { %p1272_p7 = pneg %p1271_p5 }
 0x485   : > { %1534 = dma.done.wait (%p1272_p7), %s1132_s3, 1024  }
 0x486   : > { %1536 = vsyncadd (%p1272_p7), %s1132_s3, 4294966272  ;;  %p18_p8 = scmp.ge.s32.totalorder %s1613_s22, 4   ;;  %s2248_s17 = smov %s1543_s18 }
 0x487   : > { %s2249_s18 = smov %s1547_s19  ;;  %s2250_s19 = smov %s1625_s25 }
 0x488   : > { %s2251_s20 = smov %s1613_s22  ;;  %20 = sbr.rel (!%p18_p8) target bundleno = 7 (0x7), region = 81 }
 0x48d   :  { %1137 = vsyncpa [#allocation4], 1 }
 0x48e   :  { %1139 = vsyncpa [#allocation4 + $0x1], 1 }
 0x48f   :  { %1140 = vsyncpa [#allocation5], 1 }
 0x490   :  { %1142 = vsyncpa [#allocation5 + $0x1], 1 }

</bundles_post_ra>
